<compile_context>
chip_gen: v7x
topology: tpu7x:2x2x1
jax: 0.10.0
libtpu: 0.0.40
codegen_flags: <defaults>
</compile_context>

<pallas_src>
import math
from typing import NamedTuple

import jax
import jax.numpy as jnp
from jax.experimental import pallas as pl
from jax.experimental.pallas import tpu as pltpu


def _gelu_tanh(x):
    # Matches the PyTorch reference gelu (tanh approximation).
    c = math.sqrt(2.0 / math.pi)
    return 0.5 * x * (1.0 + jnp.tanh(c * (x + 0.044715 * x * x * x)))


def _round_up(n, m):
    return ((n + m - 1) // m) * m


# Conservative footprint cap so one config fits every generation (v7x: 64 MiB/TC).
_VMEM_SAFE_BYTES = 40 << 20


def _vmem_footprint_bytes(tm, th, dp, wbytes):
    return (4 * tm * dp * 4          # x + out blocks (double-buffered), f32
            + 4 * dp * th * wbytes   # W1 + W2 blocks (double-buffered)
            + 2 * tm * th * 4        # h / g f32 temporaries
            + 4 * (th + dp) * 4)     # b1 / b2 blocks


# ----------------------------------------------------------------------------- kernel
def ffn_kernel(x_ref, w1_ref, b1_ref, w2_ref, b2_ref, o_ref):
    # x_ref : (tm, Dp) f32     token-row tile (resident across the H axis)
    # w1_ref: (Dp, th)         fc1 weight chunk (bf16 or f32)
    # b1_ref: (1, th)  f32
    # w2_ref: (th, Dp)         fc2 weight chunk
    # b2_ref: (1, Dp)  f32
    # o_ref : (tm, Dp) f32     output block, used directly as the accumulator
    k = pl.program_id(1)

    x = x_ref[...].astype(w1_ref.dtype)
    h = jnp.dot(x, w1_ref[...], preferred_element_type=jnp.float32) + b1_ref[...]
    g = _gelu_tanh(h)  # f32 activation math (v5e-safe; free under MXU on v6e/v7x)
    part = jnp.dot(g.astype(w2_ref.dtype), w2_ref[...],
                   preferred_element_type=jnp.float32)

    @pl.when(k == 0)
    def _():
        o_ref[...] = part

    @pl.when(k > 0)
    def _():
        o_ref[...] += part

    @pl.when(k == pl.num_programs(1) - 1)
    def _():
        # b2 is added exactly once, on the final H chunk.
        o_ref[...] += b2_ref[...]


# ----------------------------------------------------------------------------- params
class FFNParams(NamedTuple):
    w1: jax.Array       # (Dp, Hp), weight dtype
    b1: jax.Array       # (1, Hp), f32
    w2: jax.Array       # (Hp, Dp), weight dtype
    b2: jax.Array       # (1, Dp), f32
    d_model: int
    d_hidden: int
    block_h: int        # th used for the H-axis tiling (Hp % block_h == 0)


def prepare_ffn_params(w1, b1, w2, b2, *, th=1024, weight_dtype=jnp.bfloat16):
    """Pad + cast the FFN weights once, outside the per-call hot path.

    w1: (D, H), b1: (1, H), w2: (H, D), b2: (1, D)  — (in, out) layout.
    """
    D, H = w1.shape
    Dp = _round_up(D, 128)                       # lane-dense, unmasked stores
    wbytes = jnp.dtype(weight_dtype).itemsize

    th_eff = min(th, _round_up(H, 128))          # multiple of 128
    # Keep the double-buffered W1+W2 blocks under ~24 MiB for very wide models.
    while th_eff > 128 and 4 * Dp * th_eff * wbytes > (24 << 20):
        th_eff = max(128, _round_up(th_eff // 2, 128))
    Hp = _round_up(H, th_eff)

    w1p = jnp.pad(w1, ((0, Dp - D), (0, Hp - H))).astype(weight_dtype)
    b1p = jnp.pad(b1, ((0, 0), (0, Hp - H))).astype(jnp.float32)
    w2p = jnp.pad(w2, ((0, Hp - H), (0, Dp - D))).astype(weight_dtype)
    b2p = jnp.pad(b2, ((0, 0), (0, Dp - D))).astype(jnp.float32)
    return FFNParams(w1p, b1p, w2p, b2p, D, H, th_eff)


# ----------------------------------------------------------------------------- wrapper
def feed_forward(x, params: FFNParams, *, tm=512):
    """x: (B, S, D) float32 -> (B, S, D). params from prepare_ffn_params."""
    B, S, D = x.shape
    assert D == params.d_model, "d_model mismatch between x and params"
    Dp, Hp = params.w1.shape
    th = params.block_h
    wbytes = jnp.dtype(params.w1.dtype).itemsize
    M = B * S

    # Balanced row tiling: avoid an almost-empty trailing tile for awkward M.
    n_m = max(1, -(-M // tm))
    tm_eff = _round_up(-(-M // n_m), 8)
    # Shrink tm until the estimated VMEM footprint fits every TPU generation.
    while tm_eff > 64 and _vmem_footprint_bytes(tm_eff, th, Dp, wbytes) > _VMEM_SAFE_BYTES:
        tm_eff = max(64, _round_up(tm_eff // 2, 8))
    Mp = _round_up(M, tm_eff)

    grid = (Mp // tm_eff, Hp // th)
    footprint = _vmem_footprint_bytes(tm_eff, th, Dp, wbytes)
    vmem_limit = min(96 << 20, max(32 << 20, footprint + (8 << 20)))

    # Only the activation pad stays in the hot path (weights were pre-padded).
    x2 = jnp.pad(x.reshape(M, D), ((0, Mp - M), (0, Dp - D)))

    cost = pl.CostEstimate(
        flops=4 * Mp * Dp * Hp,                               # two matmuls
        transcendentals=Mp * Hp,                              # tanh in GELU
        bytes_accessed=(8 * Mp * Dp                           # x read + out write (f32)
                        + grid[0] * 2 * Dp * Hp * wbytes      # W1+W2 re-streamed per M tile
                        + 4 * (Hp + Dp)),                     # biases
    )

    out = pl.pallas_call(
        ffn_kernel,
        out_shape=jax.ShapeDtypeStruct((Mp, Dp), jnp.float32),
        grid_spec=pltpu.PrefetchScalarGridSpec(
            num_scalar_prefetch=0,
            grid=grid,
            in_specs=[
                pl.BlockSpec((tm_eff, Dp), lambda i, k: (i, 0)),   # x rows
                pl.BlockSpec((Dp, th), lambda i, k: (0, k)),       # W1 chunk
                pl.BlockSpec((1, th), lambda i, k: (0, k)),        # b1 chunk
                pl.BlockSpec((th, Dp), lambda i, k: (k, 0)),       # W2 chunk
                pl.BlockSpec((1, Dp), lambda i, k: (0, 0)),        # b2
                # TODO(synk): if xprof still shows exposed weight DMA on
                # v5e/v6e, add pipeline_mode=pl.Buffered(3) to the W1/W2 specs.
            ],
            out_specs=pl.BlockSpec((tm_eff, Dp), lambda i, k: (i, 0)),
        ),
        compiler_params=pltpu.CompilerParams(
            # TODO(synk): on v7x, pltpu.CORE_PARALLEL on the M axis would shard
            # row tiles across both TensorCores; "parallel" kept for portability.
            dimension_semantics=("parallel", "arbitrary"),
            vmem_limit_bytes=vmem_limit,
        ),
        cost_estimate=cost,
    )(x2, params.w1, params.b1, params.w2, params.b2)

    # TODO(synk): dropout is identity in eval mode; training-mode dropout (with
    # pltpu.prng_random_bits) is intentionally not applied here.
    return out[:M, :D].astype(x.dtype).reshape(B, S, D)


# ----------------------------------------------------------------------------- reference / init
def init_params(key, d_model):
    """Deterministic nn.Linear-style init (uniform +/- 1/sqrt(fan_in))."""
    h = 4 * d_model
    k1, k2, k3, k4 = jax.random.split(key, 4)
    bound1 = 1.0 / math.sqrt(d_model)
    bound2 = 1.0 / math.sqrt(h)
    # Stored as (in, out), i.e. transposed relative to torch's (out, in).
    w1 = jax.random.uniform(k1, (d_model, h), jnp.float32, -bound1, bound1)
    b1 = jax.random.uniform(k2, (1, h), jnp.float32, -bound1, bound1)
    w2 = jax.random.uniform(k3, (h, d_model), jnp.float32, -bound2, bound2)
    b2 = jax.random.uniform(k4, (1, d_model), jnp.float32, -bound2, bound2)
    return w1, b1, w2, b2


def feed_forward_ref(x, w1, b1, w2, b2):
    h = x @ w1 + b1[0]
    g = _gelu_tanh(h)
    return g @ w2 + b2[0]


if __name__ == "__main__":
    key = jax.random.PRNGKey(0)

    # Case 1: module-consistent small shapes (batch=2, seq=8, d_model=32),
    # default bf16-weight fast path (f32 accumulation), tolerance relaxed.
    kx, kp, key = jax.random.split(key, 3)
    batch, seq, d_model = 2, 8, 32
    x = jax.random.normal(kx, (batch, seq, d_model), jnp.float32)
    w1, b1, w2, b2 = init_params(kp, d_model)
    params = prepare_ffn_params(w1, b1, w2, b2)           # bf16 weights (default)
    y = jax.block_until_ready(feed_forward(x, params))
    y_ref = feed_forward_ref(x, w1, b1, w2, b2)
    assert y.shape == (batch, seq, d_model)
    assert jnp.allclose(y, y_ref, atol=2e-2, rtol=2e-2), "mismatch vs reference (case 1, bf16)"

    # Case 2: non-aligned shapes exercising padding + multi-H-tile accumulation,
    # with f32 weights to verify the tight-tolerance path.
    kx2, kp2 = jax.random.split(key)
    batch2, seq2, d_model2 = 3, 5, 48        # M=15 (not /8), D=48 (not /128), H=192
    x2 = jax.random.normal(kx2, (batch2, seq2, d_model2), jnp.float32)
    p2_raw = init_params(kp2, d_model2)
    params2 = prepare_ffn_params(*p2_raw, th=128, weight_dtype=jnp.float32)  # 2 H tiles
    y2 = jax.block_until_ready(feed_forward(x2, params2))
    y2_ref = feed_forward_ref(x2, *p2_raw)
    assert y2.shape == (batch2, seq2, d_model2)
    assert jnp.allclose(y2, y2_ref, atol=1e-5, rtol=1e-5), "mismatch vs reference (case 2, f32)"

    print("KERNEL_OK")
</pallas_src>

<mosaic_0001>
module attributes {stable_mosaic.version = 11 : i64} {
  func.func @ffn_kernel(%arg0: i32, %arg1: i32, %arg2: memref<16x128xf32, #tpu.memory_space<vmem>>, %arg3: memref<128x128xbf16, #tpu.memory_space<vmem>>, %arg4: memref<1x128xf32, #tpu.memory_space<vmem>>, %arg5: memref<128x128xbf16, #tpu.memory_space<vmem>>, %arg6: memref<1x128xf32, #tpu.memory_space<vmem>>, %arg7: memref<16x128xf32, #tpu.memory_space<vmem>>) attributes {dimension_semantics = [#tpu.dimension_semantics<parallel>, #tpu.dimension_semantics<arbitrary>], iteration_bounds = array<i64: 1, 1>, scalar_prefetch = 0 : i64, scratch_operands = 0 : i64, tpu.core_type = #tpu.core_type<tc>, window_params = [{transform_indices = @transform_0, window_bounds = array<i64: 16, 128>}, {transform_indices = @transform_1, window_bounds = array<i64: 128, 128>}, {transform_indices = @transform_2, window_bounds = array<i64: 1, 128>}, {transform_indices = @transform_3, window_bounds = array<i64: 128, 128>}, {pipeline_mode = #tpu.pipeline_mode<synchronous>, transform_indices = @transform_4, window_bounds = array<i64: 1, 128>}, {transform_indices = @transform_5, window_bounds = array<i64: 16, 128>}]} {
    %c0 = arith.constant 0 : index
    %c0_0 = arith.constant 0 : index
    %0 = vector.load %arg2[%c0, %c0_0] : memref<16x128xf32, #tpu.memory_space<vmem>>, vector<16x128xf32>
    %1 = arith.truncf %0 : vector<16x128xf32> to vector<16x128xbf16>
    %c0_1 = arith.constant 0 : index
    %c0_2 = arith.constant 0 : index
    %2 = vector.load %arg3[%c0_1, %c0_2] : memref<128x128xbf16, #tpu.memory_space<vmem>>, vector<128x128xbf16>
    %cst = arith.constant dense<0.000000e+00> : vector<16x128xf32>
    %3 = tpu.matmul %1, %2, %cst {dimension_numbers = #tpu.dot_dimension_numbers<[1], [0], [0], [1], [0, 0, 1, 1], [], []>} : vector<16x128xbf16>, vector<128x128xbf16>, vector<16x128xf32> -> vector<16x128xf32>
    %c0_3 = arith.constant 0 : index
    %c0_4 = arith.constant 0 : index
    %4 = vector.load %arg4[%c0_3, %c0_4] : memref<1x128xf32, #tpu.memory_space<vmem>>, vector<1x128xf32>
    %5 = vector.broadcast %4 : vector<1x128xf32> to vector<16x128xf32>
    %6 = arith.addf %3, %5 : vector<16x128xf32>
    %cst_5 = arith.constant 5.000000e-01 : f32
    %7 = vector.broadcast %cst_5 : f32 to vector<16x128xf32>
    %8 = arith.mulf %7, %6 : vector<16x128xf32>
    %cst_6 = arith.constant 4.471500e-02 : f32
    %9 = vector.broadcast %cst_6 : f32 to vector<16x128xf32>
    %10 = arith.mulf %9, %6 : vector<16x128xf32>
    %11 = arith.mulf %10, %6 : vector<16x128xf32>
    %12 = arith.mulf %11, %6 : vector<16x128xf32>
    %13 = arith.addf %6, %12 : vector<16x128xf32>
    %cst_7 = arith.constant 0.797884583 : f32
    %14 = vector.broadcast %cst_7 : f32 to vector<16x128xf32>
    %15 = arith.mulf %14, %13 : vector<16x128xf32>
    %16 = math.tanh %15 : vector<16x128xf32>
    %cst_8 = arith.constant 1.000000e+00 : f32
    %17 = vector.broadcast %cst_8 : f32 to vector<16x128xf32>
    %18 = arith.addf %17, %16 : vector<16x128xf32>
    %19 = arith.mulf %8, %18 : vector<16x128xf32>
    %20 = arith.truncf %19 : vector<16x128xf32> to vector<16x128xbf16>
    %c0_9 = arith.constant 0 : index
    %c0_10 = arith.constant 0 : index
    %21 = vector.load %arg5[%c0_9, %c0_10] : memref<128x128xbf16, #tpu.memory_space<vmem>>, vector<128x128xbf16>
    %cst_11 = arith.constant dense<0.000000e+00> : vector<16x128xf32>
    %22 = tpu.matmul %20, %21, %cst_11 {dimension_numbers = #tpu.dot_dimension_numbers<[1], [0], [0], [1], [0, 0, 1, 1], [], []>} : vector<16x128xbf16>, vector<128x128xbf16>, vector<16x128xf32> -> vector<16x128xf32>
    %c0_i32 = arith.constant 0 : i32
    %23 = arith.cmpi eq, %arg1, %c0_i32 : i32
    %24 = arith.extui %23 : i1 to i32
    %c0_i32_12 = arith.constant 0 : i32
    %25 = arith.cmpi ne, %24, %c0_i32_12 : i32
    scf.if %25 {
      %c0_17 = arith.constant 0 : index
      %c0_18 = arith.constant 0 : index
      %32 = vector.load %arg7[%c0_17, %c0_18] : memref<16x128xf32, #tpu.memory_space<vmem>>, vector<16x128xf32>
      tpu.vector_store %arg7[%c0_17, %c0_18], %22 {strides = array<i32>} : memref<16x128xf32, #tpu.memory_space<vmem>>, vector<16x128xf32>,
    } else {
    }
    %c0_i32_13 = arith.constant 0 : i32
    %26 = arith.cmpi sgt, %arg1, %c0_i32_13 : i32
    %27 = arith.extui %26 : i1 to i32
    %c0_i32_14 = arith.constant 0 : i32
    %28 = arith.cmpi ne, %27, %c0_i32_14 : i32
    scf.if %28 {
      %c0_17 = arith.constant 0 : index
      %c0_18 = arith.constant 0 : index
      %32 = vector.load %arg7[%c0_17, %c0_18] : memref<16x128xf32, #tpu.memory_space<vmem>>, vector<16x128xf32>
      %33 = arith.addf %32, %22 : vector<16x128xf32>
      %c0_19 = arith.constant 0 : index
      %c0_20 = arith.constant 0 : index
      %34 = vector.load %arg7[%c0_19, %c0_20] : memref<16x128xf32, #tpu.memory_space<vmem>>, vector<16x128xf32>
      tpu.vector_store %arg7[%c0_19, %c0_20], %33 {strides = array<i32>} : memref<16x128xf32, #tpu.memory_space<vmem>>, vector<16x128xf32>,
    } else {
    }
    %c0_i32_15 = arith.constant 0 : i32
    %29 = arith.cmpi eq, %arg1, %c0_i32_15 : i32
    %30 = arith.extui %29 : i1 to i32
    %c0_i32_16 = arith.constant 0 : i32
    %31 = arith.cmpi ne, %30, %c0_i32_16 : i32
    scf.if %31 {
      %c0_17 = arith.constant 0 : index
      %c0_18 = arith.constant 0 : index
      %32 = vector.load %arg7[%c0_17, %c0_18] : memref<16x128xf32, #tpu.memory_space<vmem>>, vector<16x128xf32>
      %c0_19 = arith.constant 0 : index
      %c0_20 = arith.constant 0 : index
      %33 = vector.load %arg6[%c0_19, %c0_20] : memref<1x128xf32, #tpu.memory_space<vmem>>, vector<1x128xf32>
      %34 = vector.broadcast %33 : vector<1x128xf32> to vector<16x128xf32>
      %35 = arith.addf %32, %34 : vector<16x128xf32>
      %c0_21 = arith.constant 0 : index
      %c0_22 = arith.constant 0 : index
      %36 = vector.load %arg7[%c0_21, %c0_22] : memref<16x128xf32, #tpu.memory_space<vmem>>, vector<16x128xf32>
      tpu.vector_store %arg7[%c0_21, %c0_22], %35 {strides = array<i32>} : memref<16x128xf32, #tpu.memory_space<vmem>>, vector<16x128xf32>,
    } else {
    }
    return
  }
  func.func @transform_0(%arg0: i32, %arg1: i32) -> (i32, i32) {
    %c0_i32 = arith.constant 0 : i32
    %c0_i32_0 = arith.constant 0 : i32
    return %arg0, %c0_i32 : i32, i32
  }
  func.func @transform_1(%arg0: i32, %arg1: i32) -> (i32, i32) {
    %c0_i32 = arith.constant 0 : i32
    %c0_i32_0 = arith.constant 0 : i32
    return %c0_i32, %arg1 : i32, i32
  }
  func.func @transform_2(%arg0: i32, %arg1: i32) -> (i32, i32) {
    %c0_i32 = arith.constant 0 : i32
    %c0_i32_0 = arith.constant 0 : i32
    return %c0_i32, %arg1 : i32, i32
  }
  func.func @transform_3(%arg0: i32, %arg1: i32) -> (i32, i32) {
    %c0_i32 = arith.constant 0 : i32
    %c0_i32_0 = arith.constant 0 : i32
    return %arg1, %c0_i32 : i32, i32
  }
  func.func @transform_4(%arg0: i32, %arg1: i32) -> (i32, i32) {
    %c0_i32 = arith.constant 0 : i32
    %c0_i32_0 = arith.constant 0 : i32
    %c0_i32_1 = arith.constant 0 : i32
    return %c0_i32, %c0_i32_0 : i32, i32
  }
  func.func @transform_5(%arg0: i32, %arg1: i32) -> (i32, i32) {
    %c0_i32 = arith.constant 0 : i32
    %c0_i32_0 = arith.constant 0 : i32
    return %arg0, %c0_i32 : i32, i32
  }
}

</mosaic_0001>

<bundles_post_ra>
// kernel: tpu_custom_call.1
= control target key start
LH: loop header
LB: loop body
LE: loop exit
PB: predicated region body
PF: predicated region fallthrough
CT: control target
= control target key end

     0   :  { %10 = vsyncpa [#allocation3], 0  ;;  %s658_s0 = inlined_call_operand.hbm [shape: f32[16,128], index: 0, kind: input, shape index: {}]   ;;  %s659_s1 = inlined_call_operand.hbm [shape: bf16[128,128], index: 1, kind: input, shape index: {}]   ;;  %s660_s2 = inlined_call_operand.vmem [shape: f32[1,128], index: 2, kind: input, shape index: {}]   ;;  %s661_s3 = inlined_call_operand.hbm [shape: bf16[128,128], index: 3, kind: input, shape index: {}]   ;;  %s662_s4 = inlined_call_operand.vmem [shape: f32[1,128], index: 4, kind: input, shape index: {}]   ;;  %s663_s5 = inlined_call_operand.hbm [shape: f32[16,128], index: 5, kind: output, shape index: {}]  }
   0x1   :  { %11 = vsyncpa [#allocation6], 0 }
   0x2   :  { %12 = vsyncpa [#allocation4], 0  ;;  %s552_s18 = smov [#allocation5]   ;;  %s458_s22 = scalar_lea.hbm %s659_s1, 1024 }
   0x3   :  { %s30_s19 = sshll.u32 %s552_s18, 4  ;;  %p459_p0 = scmp.ne.s32.totalorder %s659_s1, %s458_s22  ;;  %s31_s19 = int_to_ptr.vmem [resolvable:$true] %s30_s19 }
   0x4   :  { %p462_p1 = scmp.lt.u32.totalorder %s458_s22, %s659_s1 }
   0x6   :  { %p464_p2 = pnand %p462_p1, %p459_p0 }
   0x8   :  { %467 = shalt.err (!%p464_p2)
}
   0x9   :  { %s468_s27 = scalar_lea.vmem %s31_s19, 1024  ;;  %p473_p4 = scmp.lt.s32.totalorder %s31_s19, %s31_s19 }
   0xa   :  { %p469_p3 = scmp.ne.s32.totalorder %s31_s19, %s468_s27  ;;  %p474_p5 = scmp.lt.s32.totalorder %s468_s27, %s468_s27 }
   0xc   :  { %p475_p6 = por %p474_p5, %p473_p4 }
   0xe   :  { %p476_p7 = pnand %p475_p6, %p469_p3 }
  0x10   :  { %479 = shalt.err (!%p476_p7)
}
  0x11   :  { %s553_s28 = smov 64   ;;  %s554_s29 = smov 4  }
  0x12   :  { %36 = dma.hbm_to_vmem [thread:$0]  %s659_s1, 1024, %s31_s19, [#allocation6], %s553_s28, %s553_s28, %s554_s29  }
  0x13   :  { %s555_s7 = smov [#allocation2]   ;;  %s480_s11 = scalar_lea.hbm %s658_s0, 256 }
  0x14   :  { %s18_s8 = sshll.u32 %s555_s7, 4  ;;  %p481_p8 = scmp.ne.s32.totalorder %s658_s0, %s480_s11  ;;  %s19_s8 = int_to_ptr.vmem [resolvable:$true] %s18_s8 }
  0x15   :  { %p484_p9 = scmp.lt.u32.totalorder %s480_s11, %s658_s0 }
  0x17   :  { %p486_p10 = pnand %p484_p9, %p481_p8 }
  0x19   :  { %489 = shalt.err (!%p486_p10)
}
  0x1a   :  { %s490_s16 = scalar_lea.vmem %s19_s8, 256  ;;  %p495_p12 = scmp.lt.s32.totalorder %s19_s8, %s19_s8 }
  0x1b   :  { %p491_p11 = scmp.ne.s32.totalorder %s19_s8, %s490_s16  ;;  %p496_p13 = scmp.lt.s32.totalorder %s490_s16, %s490_s16 }
  0x1d   :  { %p497_p0 = por %p496_p13, %p495_p12 }
  0x1f   :  { %p498_p1 = pnand %p497_p0, %p491_p11 }
  0x21   :  { %501 = shalt.err (!%p498_p1)
}
  0x22   :  { %s556_s1 = smov 128   ;;  %s557_s17 = smov 8  }
  0x23   :  { %24 = dma.hbm_to_vmem [thread:$0]  %s658_s0, 256, %s19_s8, [#allocation3], %s556_s1, %s556_s1, %s557_s17  }
  0x24   :  { %s558_s20 = smov [#allocation7]   ;;  %s502_s24 = scalar_lea.hbm %s661_s3, 1024 }
  0x25   :  { %s44_s21 = sshll.u32 %s558_s20, 4  ;;  %p503_p2 = scmp.ne.s32.totalorder %s661_s3, %s502_s24  ;;  %s45_s21 = int_to_ptr.vmem [resolvable:$true] %s44_s21 }
  0x26   :  { %p506_p3 = scmp.lt.u32.totalorder %s502_s24, %s661_s3 }
  0x28   :  { %p508_p4 = pnand %p506_p3, %p503_p2 }
  0x2a   :  { %511 = shalt.err (!%p508_p4)
}
  0x2b   :  { %s512_s6 = scalar_lea.vmem %s45_s21, 1024  ;;  %p517_p6 = scmp.lt.s32.totalorder %s45_s21, %s45_s21 }
  0x2c   :  { %p513_p5 = scmp.ne.s32.totalorder %s45_s21, %s512_s6  ;;  %p518_p7 = scmp.lt.s32.totalorder %s512_s6, %s512_s6 }
  0x2e   :  { %p519_p8 = por %p518_p7, %p517_p6 }
  0x30   :  { %p520_p9 = pnand %p519_p8, %p513_p5 }
  0x32   :  { %523 = shalt.err (!%p520_p9)
}
  0x33   :  { %50 = dma.hbm_to_vmem [thread:$0]  %s661_s3, 1024, %s45_s21, [#allocation6], %s553_s28, %s553_s28, %s554_s29  }
  0x34   :  { %546 = dma.done.wait [#allocation3], 256  }
  0x35   :  { %547 = vsyncadd [#allocation3], 4294967040 }
  0x36   :  { %548 = dma.done.wait [#allocation6], 2048  }
  0x37   :  { %549 = vsyncadd [#allocation6], 4294965248  ;;  %v559_v0 = vmov 0.0   ;;  %vm560_vm0 = vmmov 0   ;;  %v438_v1 = vld [vmem:[#allocation5] sm:$0xff]   ;;  %v439_v2 = vld [vmem:[#allocation5 + $0x8] sm:$0xff]  }
  0x38   :  { %388 = vmatprep.subr.bf16.mxu0 %v559_v0  ;;  %404 = vmatprep.mubr.msk.bf16.mxu0 %vm560_vm0, %v559_v0  ;;  %v440_v3 = vld [vmem:[#allocation5 + $0x10] sm:$0xff]   ;;  %v441_v4 = vld [vmem:[#allocation5 + $0x18] sm:$0xff]   ;;  %v442_v5 = vld [vmem:[#allocation5 + $0x20] sm:$0xff]   ;;  %s561_s8 = smov [#allocation8]  }
  0x39   :  { %408 = vmatprep.subr.bf16.mxu1 %v559_v0  ;;  %424 = vmatprep.mubr.msk.bf16.mxu1 %vm560_vm0, %v559_v0  ;;  %v443_v6 = vld [vmem:[#allocation5 + $0x28] sm:$0xff]   ;;  %v444_v7 = vld [vmem:[#allocation5 + $0x30] sm:$0xff]   ;;  %v445_v8 = vld [vmem:[#allocation5 + $0x38] sm:$0xff]   ;;  %s339_s9 = sshll.u32 %s561_s8, 4  ;;  %s340_s9 = int_to_ptr.vmem [resolvable:$true] %s339_s9 }
  0x3a   :  { %389 = vmatpush3.bf16.msra.mxu0 %v438_v1  ;;  %v63_v9 = vld [vmem:[#allocation2] sm:$0xff]  ;;  %v64_v10 = vld [vmem:[#allocation2 + $0x8] sm:$0xff]  ;;  %v446_v12 = vld [vmem:[#allocation7] sm:$0xff]   ;;  %s524_s10 = scalar_lea.vmem %s340_s9, 256  ;;  %p529_p11 = scmp.lt.s32.totalorder %s340_s9, %s340_s9 }
  0x3b   :  { %390 = vmatprep.subr.bf16.mxu0 %v559_v0  ;;  %v65_v11 = vpack.c.bf16 %v64_v10, %v63_v9  ;;  %409 = vmatpush3.bf16.msra.mxu1 %v446_v12  ;;  %v447_v13 = vld [vmem:[#allocation7 + $0x8] sm:$0xff]   ;;  %v448_v14 = vld [vmem:[#allocation7 + $0x10] sm:$0xff]   ;;  %v449_v15 = vld [vmem:[#allocation7 + $0x18] sm:$0xff]   ;;  %p525_p10 = scmp.ne.s32.totalorder %s340_s9, %s524_s10  ;;  %p530_p12 = scmp.lt.s32.totalorder %s524_s10, %s524_s10 }
  0x3c   :  { %410 = vmatprep.subr.bf16.mxu1 %v559_v0  ;;  %v450_v16 = vld [vmem:[#allocation7 + $0x20] sm:$0xff]   ;;  %v451_v17 = vld [vmem:[#allocation7 + $0x28] sm:$0xff]   ;;  %v452_v18 = vld [vmem:[#allocation7 + $0x30] sm:$0xff]  }
  0x3d   :  { %v453_v19 = vld [vmem:[#allocation7 + $0x38] sm:$0xff]   ;;  %v352_v20 = vld [vmem:[%s660_s2] ss:$0 sm:$0xff]  ;;  %p531_p13 = por %p530_p12, %p529_p11 }
  0x3e   :  { %391 = vmatpush3.bf16.msra.mxu0 %v439_v2  ;;  %v369_v46 = vld [vmem:[%s662_s4] ss:$0 sm:$0xff] }
  0x3f   :  { %392 = vmatprep.subr.bf16.mxu0 %v559_v0  ;;  %411 = vmatpush3.bf16.msra.mxu1 %v447_v13  ;;  %p532_p0 = pnand %p531_p13, %p525_p10 }
  0x40   :  { %412 = vmatprep.subr.bf16.mxu1 %v559_v0 }
  0x42   :  { %393 = vmatpush3.bf16.msra.mxu0 %v440_v3 }
  0x43   :  { %394 = vmatprep.subr.bf16.mxu0 %v559_v0  ;;  %413 = vmatpush3.bf16.msra.mxu1 %v448_v14 }
  0x44   :  { %414 = vmatprep.subr.bf16.mxu1 %v559_v0 }
  0x46   :  { %395 = vmatpush3.bf16.msra.mxu0 %v441_v4 }
  0x47   :  { %396 = vmatprep.subr.bf16.mxu0 %v559_v0  ;;  %415 = vmatpush3.bf16.msra.mxu1 %v449_v15 }
  0x48   :  { %416 = vmatprep.subr.bf16.mxu1 %v559_v0 }
  0x4a   :  { %397 = vmatpush3.bf16.msra.mxu0 %v442_v5 }
  0x4b   :  { %398 = vmatprep.subr.bf16.mxu0 %v559_v0  ;;  %417 = vmatpush3.bf16.msra.mxu1 %v450_v16 }
  0x4c   :  { %418 = vmatprep.subr.bf16.mxu1 %v559_v0 }
  0x4e   :  { %399 = vmatpush3.bf16.msra.mxu0 %v443_v6 }
  0x4f   :  { %400 = vmatprep.subr.bf16.mxu0 %v559_v0  ;;  %419 = vmatpush3.bf16.msra.mxu1 %v451_v17 }
  0x50   :  { %420 = vmatprep.subr.bf16.mxu1 %v559_v0 }
  0x52   :  { %401 = vmatpush3.bf16.msra.mxu0 %v444_v7 }
  0x53   :  { %402 = vmatprep.subr.bf16.mxu0 %v559_v0  ;;  %421 = vmatpush3.bf16.msra.mxu1 %v452_v18 }
  0x54   :  { %422 = vmatprep.subr.bf16.mxu1 %v559_v0 }
  0x56   :  { %403 = vmatpush3.bf16.msra.mxu0 %v445_v8 }
  0x57   :  { %423 = vmatpush3.bf16.msra.mxu1 %v453_v19 }
  0x59   :  { %405 = vmatmul.mubr.bf16.vlgmr.msra.gmra.mrb[0].mxu0 %v65_v11 }
 0x12c   :  { %v171_v21 = vpop.f32.mrb[0].mxu0 }
 0x12d   :  { %v172_v22 = vadd.f32 %v352_v20, %v171_v21  ;;  %v406_v23 = vpop.f32.mrb[1].mxu0 }
 0x12e   :  { %v174_v24 = vpop.f32.mrb[2].mxu0 }
 0x12f   :  { %v180_v25 = vmul.f32 0.044715, %v172_v22  ;;  %v175_v26 = vadd.f32 %v352_v20, %v174_v24  ;;  %v407_v27 = vpop.f32.mrb[3].mxu0  ;;  %v178_v40 = vmul.f32 0.5, %v172_v22 }
 0x131   :  { %v182_v28 = vmul.f32 %v180_v25, %v172_v22  ;;  %v181_v29 = vmul.f32 0.044715, %v175_v26  ;;  %v179_v41 = vmul.f32 0.5, %v175_v26 }
 0x133   :  { %v184_v30 = vmul.f32 %v182_v28, %v172_v22  ;;  %v183_v31 = vmul.f32 %v181_v29, %v175_v26 }
 0x135   :  { %v185_v32 = vmul.f32 %v183_v31, %v175_v26  ;;  %v186_v33 = vadd.f32 %v184_v30, %v172_v22 }
 0x137   :  { %v187_v34 = vadd.f32 %v185_v32, %v175_v26  ;;  %v188_v35 = vmul.f32 0.7978846, %v186_v33 }
 0x139   :  { %v189_v36 = vmul.f32 0.7978846, %v187_v34  ;;  %454 = vtanh.f32 %v188_v35 }
 0x13b   :  { %456 = vtanh.f32 %v189_v36 }
 0x143   :  { %v455_v37 = vpop.eup %454 }
 0x144   :  { %v192_v38 = vadd.f32 1.0, %v455_v37 }
 0x145   :  { %v457_v39 = vpop.eup %456 }
 0x146   :  { %v193_v42 = vadd.f32 1.0, %v457_v39  ;;  %v194_v43 = vmul.f32 %v192_v38, %v178_v40 }
 0x148   :  { %v195_v44 = vmul.f32 %v193_v42, %v179_v41 }
 0x14a   :  { %v196_v45 = vpack.c.bf16 %v195_v44, %v194_v43 }
 0x14c   :  { %425 = vmatmul.mubr.bf16.vlgmr.msra.gmra.mrb[0].mxu1 %v196_v45 }
 0x21f   :  { %v295_v47 = vpop.f32.mrb[0].mxu1 }
 0x220   :  { %v426_v48 = vpop.f32.mrb[1].mxu1  ;;  %v330_v49 = vadd.f32 %v369_v46, %v295_v47 }
 0x221   :  { %v298_v50 = vpop.f32.mrb[2].mxu1 }
 0x222   :  { %v427_v51 = vpop.f32.mrb[3].mxu1  ;;  %v331_v52 = vadd.f32 %v369_v46, %v298_v50  ;;  %332 = vst [vmem:[#allocation8] sm:$0xff] %v330_v49 }
 0x224   :  { %333 = vst [vmem:[#allocation8 + $0x8] sm:$0xff] %v331_v52 }
 0x225   :  { %535 = shalt.err (!%p532_p0)
}
 0x226   :  { %s536_s12 = scalar_lea.hbm %s663_s5, 256 }
 0x227   :  { %p537_p1 = scmp.ne.s32.totalorder %s663_s5, %s536_s12  ;;  %p540_p2 = scmp.lt.u32.totalorder %s536_s12, %s663_s5 }
 0x229   :  { %p542_p3 = pnand %p540_p2, %p537_p1 }
 0x22b   :  { %545 = shalt.err (!%p542_p3)
}
 0x22c   :  { %345 = dma.vmem_to_hbm [thread:$0]  %s340_s9, 256, %s663_s5, [#allocation4], %s556_s1, %s556_s1, %s557_s17  }
 0x22d   :  { %550 = dma.done.wait [#allocation4], 256  }
 0x22e   :  { %551 = vsyncadd [#allocation4], 4294967040 }
 0x22f   :  { %349 = vsyncpa [#allocation3], 1 }
 0x230   :  { %350 = vsyncpa [#allocation6], 1 }
 0x231   :  { %351 = vsyncpa [#allocation4], 1 }

</bundles_post_ra>
